<compile_context>
chip_gen: v7x
topology: tpu7x:2x2x1
jax: 0.10.0
libtpu: 0.0.40
codegen_flags: <defaults>
</compile_context>

<pallas_src>
import functools

import jax
import jax.numpy as jnp
from jax import lax
from jax.experimental import pallas as pl
from jax.experimental.pallas import tpu as pltpu


def _round_up(x, m):
    return ((x + m - 1) // m) * m


def _leaky_relu(x, slope=0.01):
    return jnp.where(x > 0, x, slope * x)


# --------------- node projection: nmsg = nodes @ w_node (no bias) ------------
def _node_proj_kernel(nodes_ref, w_ref, out_ref):
    out_ref[...] = jnp.dot(nodes_ref[...], w_ref[...],
                           preferred_element_type=jnp.float32)


def _node_projection(nodes_p, w_node_p, *, tile_n):
    N_pad, Cn = nodes_p.shape
    Hp = w_node_p.shape[1]
    return pl.pallas_call(
        _node_proj_kernel,
        out_shape=jax.ShapeDtypeStruct((N_pad, Hp), jnp.float32),
        grid_spec=pltpu.PrefetchScalarGridSpec(
            num_scalar_prefetch=0,
            grid=(N_pad // tile_n,),
            in_specs=[
                pl.BlockSpec((tile_n, Cn), lambda i: (i, 0)),
                pl.BlockSpec((Cn, Hp), lambda i: (0, 0)),
            ],
            out_specs=pl.BlockSpec((tile_n, Hp), lambda i: (i, 0)),
        ),
        compiler_params=pltpu.CompilerParams(
            dimension_semantics=("parallel",),
            vmem_limit_bytes=32 * 1024 * 1024),
    )(nodes_p, w_node_p)


# -------- main fused kernel: edge MLP + compose + scatter-add ----------------
def _message_kernel(edges_ref, nmsg_g_ref, seg_ref,
                    we1_ref, be1_ref, we2_ref, be2_ref,
                    out_ref, *, tile_n):
    e_idx = pl.program_id(1)

    # Output block is resident across the (innermost, "arbitrary") E axis.
    @pl.when(e_idx == 0)
    def _():
        out_ref[...] = jnp.zeros_like(out_ref)

    # edge_projection: Linear + LeakyReLU, twice (Dropout = identity in eval).
    # NOTE: recomputed per N-tile; with tile_n >= 256 this overhead is small
    # relative to the scatter matmul, and N-tiles shard across v7x's 2 TCs.
    h = jnp.dot(edges_ref[...], we1_ref[...],
                preferred_element_type=jnp.float32) + be1_ref[...]
    h = _leaky_relu(h)
    h = jnp.dot(h, we2_ref[...],
                preferred_element_type=jnp.float32) + be2_ref[...]
    h = _leaky_relu(h)                                        # [tE, Hp]

    # message_composing: gathered node projection * edge projection.
    msgs = nmsg_g_ref[...] * h                                # [tE, Hp]

    # message_aggregation: scatter-add as a [tN, tE] one-hot matmul on the MXU,
    # accumulated into the resident output block across E-tiles.
    seg_row = seg_ref[...]                                    # [1, tE] int32
    t_e = seg_row.shape[1]
    n_base = pl.program_id(0) * tile_n
    node_ids = lax.broadcasted_iota(jnp.int32, (tile_n, t_e), 0) + n_base
    scatter_oh = (node_ids == seg_row).astype(jnp.float32)    # [tN, tE]
    out_ref[...] += jnp.dot(scatter_oh, msgs,
                            preferred_element_type=jnp.float32)


def message_passing(nodes, edges, segmentation_index, index, params,
                    *, tile_e=512, tile_n=256):
    N, Cn = nodes.shape
    E, Ce = edges.shape
    H = params["w_node"].shape[1]
    assert H == Cn, "index_add requires hidden_channels == node_channels"

    f32 = jnp.float32
    # Lane-dense feature dim (pad H up to a multiple of 128).
    Hp = _round_up(max(H, 128), 128)
    tN = min(tile_n, _round_up(N, 8))
    N_pad = _round_up(N, tN)
    tE = min(tile_e, _round_up(E, 128))
    E_pad = _round_up(E, tE)

    # Zero-pad parameters on the hidden axis (exactly preserves the math).
    w_node_p = jnp.zeros((Cn, Hp), f32).at[:, :H].set(params["w_node"].astype(f32))
    w_e1_p = jnp.zeros((Ce, Hp), f32).at[:, :H].set(params["w_e1"].astype(f32))
    b_e1_p = jnp.zeros((1, Hp), f32).at[:, :H].set(params["b_e1"].reshape(1, H).astype(f32))
    w_e2_p = jnp.zeros((Hp, Hp), f32).at[:H, :H].set(params["w_e2"].astype(f32))
    b_e2_p = jnp.zeros((1, Hp), f32).at[:, :H].set(params["b_e2"].reshape(1, H).astype(f32))

    # Pad ragged dims.  Padded edges get seg = -1 so they contribute nothing.
    nodes_p = jnp.zeros((N_pad, Cn), f32).at[:N].set(nodes.astype(f32))
    edges_p = jnp.zeros((E_pad, Ce), f32).at[:E].set(edges.astype(f32))
    idx_p = jnp.zeros((E_pad,), jnp.int32).at[:E].set(index.astype(jnp.int32))
    seg_p = jnp.full((E_pad,), -1, jnp.int32).at[:E].set(
        segmentation_index.astype(jnp.int32)).reshape(1, E_pad)

    # Node projection: one tiny Pallas matmul, computed once (not per E-tile).
    nmsg = _node_projection(nodes_p, w_node_p, tile_n=tN)     # [N_pad, Hp]

    # TODO(synk): index_select is done with XLA's native gather here; a
    # tile-granular data-dependent row gather has no clean Pallas TPU
    # equivalent (only per-edge DMA or restricted in-kernel gather paths).
    nmsg_g = jnp.take(nmsg, idx_p, axis=0)                    # [E_pad, Hp]

    n_tiles = N_pad // tN
    e_tiles = E_pad // tE

    mlp_flops = 2 * E_pad * (Ce * Hp + Hp * Hp)
    scatter_flops = 2 * E_pad * N_pad * Hp
    bytes_accessed = 4 * (n_tiles * E_pad * (Ce + Hp + 1)
                          + N_pad * Hp
                          + Ce * Hp + Hp * Hp + 2 * Hp)
    cost = pl.CostEstimate(flops=int(n_tiles * mlp_flops + scatter_flops),
                           transcendentals=0,
                           bytes_accessed=int(bytes_accessed))

    kernel = functools.partial(_message_kernel, tile_n=tN)
    out_p = pl.pallas_call(
        kernel,
        out_shape=jax.ShapeDtypeStruct((N_pad, Hp), jnp.float32),
        grid_spec=pltpu.PrefetchScalarGridSpec(
            num_scalar_prefetch=0,
            grid=(n_tiles, e_tiles),
            in_specs=[
                pl.BlockSpec((tE, Ce), lambda n, e: (e, 0)),   # edges
                pl.BlockSpec((tE, Hp), lambda n, e: (e, 0)),   # gathered node proj
                pl.BlockSpec((1, tE), lambda n, e: (0, e)),    # seg (lane-dense)
                pl.BlockSpec((Ce, Hp), lambda n, e: (0, 0)),   # w_e1
                pl.BlockSpec((1, Hp), lambda n, e: (0, 0)),    # b_e1
                pl.BlockSpec((Hp, Hp), lambda n, e: (0, 0)),   # w_e2
                pl.BlockSpec((1, Hp), lambda n, e: (0, 0)),    # b_e2
            ],
            out_specs=pl.BlockSpec((tN, Hp), lambda n, e: (n, 0)),
        ),
        compiler_params=pltpu.CompilerParams(
            dimension_semantics=("parallel", "arbitrary"),
            vmem_limit_bytes=32 * 1024 * 1024),
        cost_estimate=cost,
    )(edges_p, nmsg_g, seg_p, w_e1_p, b_e1_p, w_e2_p, b_e2_p)

    return out_p[:N, :H]


def reference(nodes, edges, segmentation_index, index, params):
    h = jnp.dot(edges, params["w_e1"]) + params["b_e1"]
    h = jnp.where(h > 0, h, 0.01 * h)
    h = jnp.dot(h, params["w_e2"]) + params["b_e2"]
    h = jnp.where(h > 0, h, 0.01 * h)
    nmsg = jnp.dot(nodes, params["w_node"])
    msgs = nmsg[index] * h
    out = jnp.zeros_like(nodes).at[segmentation_index].add(msgs)
    return out


if __name__ == "__main__":
    N = 16            # number of nodes
    E = 64            # number of edges
    node_channels = 32
    edge_channels = 16
    hidden_channels = 32   # must equal node_channels (index_add into zeros_like(nodes))

    key = jax.random.PRNGKey(0)
    k = jax.random.split(key, 8)

    nodes = jax.random.normal(k[0], (N, node_channels), dtype=jnp.float32)
    edges = jax.random.normal(k[1], (E, edge_channels), dtype=jnp.float32)
    index = jax.random.randint(k[2], (E,), 0, N, dtype=jnp.int32)
    segmentation_index = jax.random.randint(k[3], (E,), 0, N, dtype=jnp.int32)

    params = {
        "w_node": jax.random.normal(k[4], (node_channels, hidden_channels), jnp.float32) * 0.1,
        "w_e1":   jax.random.normal(k[5], (edge_channels, hidden_channels), jnp.float32) * 0.1,
        "b_e1":   jnp.full((1, hidden_channels), 0.01, jnp.float32),
        "w_e2":   jax.random.normal(k[6], (hidden_channels, hidden_channels), jnp.float32) * 0.1,
        "b_e2":   jnp.full((1, hidden_channels), -0.01, jnp.float32),
    }

    out = message_passing(nodes, edges, segmentation_index, index, params)
    out = jax.block_until_ready(out)

    ref = reference(nodes, edges, segmentation_index, index, params)
    assert out.shape == (N, hidden_channels)
    assert jnp.allclose(out, ref, atol=1e-4, rtol=1e-4), "mismatch vs. JAX reference"

    print("KERNEL_OK")
</pallas_src>

<mosaic_0001>
module attributes {stable_mosaic.version = 11 : i64} {
  func.func @_node_proj_kernel(%arg0: i32, %arg1: memref<16x32xf32, #tpu.memory_space<vmem>>, %arg2: memref<32x128xf32, #tpu.memory_space<vmem>>, %arg3: memref<16x128xf32, #tpu.memory_space<vmem>>) attributes {dimension_semantics = [#tpu.dimension_semantics<parallel>], iteration_bounds = array<i64: 1>, scalar_prefetch = 0 : i64, scratch_operands = 0 : i64, tpu.core_type = #tpu.core_type<tc>, window_params = [{transform_indices = @transform_0, window_bounds = array<i64: 16, 32>}, {pipeline_mode = #tpu.pipeline_mode<synchronous>, transform_indices = @transform_1, window_bounds = array<i64: 32, 128>}, {transform_indices = @transform_2, window_bounds = array<i64: 16, 128>}]} {
    %c0 = arith.constant 0 : index
    %c0_0 = arith.constant 0 : index
    %0 = vector.load %arg1[%c0, %c0_0] : memref<16x32xf32, #tpu.memory_space<vmem>>, vector<16x32xf32>
    %c0_1 = arith.constant 0 : index
    %c0_2 = arith.constant 0 : index
    %1 = vector.load %arg2[%c0_1, %c0_2] : memref<32x128xf32, #tpu.memory_space<vmem>>, vector<32x128xf32>
    %cst = arith.constant dense<0.000000e+00> : vector<16x128xf32>
    %2 = tpu.matmul %0, %1, %cst {dimension_numbers = #tpu.dot_dimension_numbers<[1], [0], [0], [1], [0, 0, 1, 1], [], []>} : vector<16x32xf32>, vector<32x128xf32>, vector<16x128xf32> -> vector<16x128xf32>
    %c0_3 = arith.constant 0 : index
    %c0_4 = arith.constant 0 : index
    %3 = vector.load %arg3[%c0_3, %c0_4] : memref<16x128xf32, #tpu.memory_space<vmem>>, vector<16x128xf32>
    tpu.vector_store %arg3[%c0_3, %c0_4], %2 {strides = array<i32>} : memref<16x128xf32, #tpu.memory_space<vmem>>, vector<16x128xf32>,
    return
  }
  func.func @transform_0(%arg0: i32) -> (i32, i32) {
    %c0_i32 = arith.constant 0 : i32
    %c0_i32_0 = arith.constant 0 : i32
    return %arg0, %c0_i32 : i32, i32
  }
  func.func @transform_1(%arg0: i32) -> (i32, i32) {
    %c0_i32 = arith.constant 0 : i32
    %c0_i32_0 = arith.constant 0 : i32
    %c0_i32_1 = arith.constant 0 : i32
    return %c0_i32, %c0_i32_0 : i32, i32
  }
  func.func @transform_2(%arg0: i32) -> (i32, i32) {
    %c0_i32 = arith.constant 0 : i32
    %c0_i32_0 = arith.constant 0 : i32
    return %arg0, %c0_i32 : i32, i32
  }
}

</mosaic_0001>

<bundles_post_ra>
// kernel: tpu_custom_call.1
= control target key start
LH: loop header
LB: loop body
LE: loop exit
PB: predicated region body
PF: predicated region fallthrough
CT: control target
= control target key end

     0   :  { %7 = vsyncpa [#allocation3], 0  ;;  %s317_s0 = inlined_call_operand.hbm [shape: f32[16,32], index: 0, kind: input, shape index: {}]   ;;  %s318_s1 = inlined_call_operand.hbm [shape: f32[32,128], index: 1, kind: input, shape index: {}]   ;;  %s319_s2 = inlined_call_operand.hbm [shape: f32[16,128], index: 2, kind: output, shape index: {}]  }
   0x1   :  { %8 = vsyncpa [#allocation6], 0 }
   0x2   :  { %9 = vsyncpa [#allocation4], 0  ;;  %s252_s9 = smov [#allocation2]   ;;  %s180_s13 = scalar_lea.hbm %s317_s0, 256 }
   0x3   :  { %s15_s10 = sshll.u32 %s252_s9, 4  ;;  %p181_p0 = scmp.ne.s32.totalorder %s317_s0, %s180_s13  ;;  %s16_s10 = int_to_ptr.vmem [resolvable:$true] %s15_s10 }
   0x4   :  { %p184_p1 = scmp.lt.u32.totalorder %s180_s13, %s317_s0 }
   0x6   :  { %p186_p2 = pnand %p184_p1, %p181_p0 }
   0x8   :  { %189 = shalt.err (!%p186_p2)
}
   0x9   :  { %s190_s18 = scalar_lea.vmem %s16_s10, 256  ;;  %p195_p4 = scmp.lt.s32.totalorder %s16_s10, %s16_s10 }
   0xa   :  { %p191_p3 = scmp.ne.s32.totalorder %s16_s10, %s190_s18  ;;  %p196_p5 = scmp.lt.s32.totalorder %s190_s18, %s190_s18 }
   0xc   :  { %p197_p6 = por %p196_p5, %p195_p4 }
   0xe   :  { %p198_p7 = pnand %p197_p6, %p191_p3 }
  0x10   :  { %201 = shalt.err (!%p198_p7)
}
  0x11   :  { %s253_s19 = smov 128   ;;  %s254_s20 = smov 8  }
  0x12   :  { %21 = dma.hbm_to_vmem [thread:$0]  %s317_s0, 256, %s16_s10, [#allocation3], %s253_s19, %s253_s19, %s254_s20  }
  0x13   :  { %s255_s23 = smov [#allocation5]   ;;  %s202_s27 = scalar_lea.hbm %s318_s1, 512 }
  0x14   :  { %s27_s24 = sshll.u32 %s255_s23, 4  ;;  %p203_p8 = scmp.ne.s32.totalorder %s318_s1, %s202_s27  ;;  %s28_s24 = int_to_ptr.vmem [resolvable:$true] %s27_s24 }
  0x15   :  { %p206_p9 = scmp.lt.u32.totalorder %s202_s27, %s318_s1 }
  0x17   :  { %p208_p10 = pnand %p206_p9, %p203_p8 }
  0x19   :  { %211 = shalt.err (!%p208_p10)
}
  0x1a   :  { %s212_s4 = scalar_lea.vmem %s28_s24, 512  ;;  %p217_p12 = scmp.lt.s32.totalorder %s28_s24, %s28_s24 }
  0x1b   :  { %p213_p11 = scmp.ne.s32.totalorder %s28_s24, %s212_s4  ;;  %p218_p13 = scmp.lt.s32.totalorder %s212_s4, %s212_s4 }
  0x1d   :  { %p219_p0 = por %p218_p13, %p217_p12 }
  0x1f   :  { %p220_p1 = pnand %p219_p0, %p213_p11 }
  0x21   :  { %223 = shalt.err (!%p220_p1)
}
  0x22   :  { %33 = dma.hbm_to_vmem [thread:$0]  %s318_s1, 512, %s28_s24, [#allocation6], %s253_s19, %s253_s19, %s254_s20  }
  0x23   :  { %246 = dma.done.wait [#allocation3], 256  }
  0x24   :  { %247 = vsyncadd [#allocation3], 4294967040 }
  0x25   :  { %248 = dma.done.wait [#allocation6], 512  }
  0x26   :  { %249 = vsyncadd [#allocation6], 4294966784  ;;  %vm46_vm0 = vcmask 261120   ;;  %v42_v0 = vld [vmem:[#allocation5] sm:$0xff]  ;;  %v43_v1 = vld [vmem:[#allocation5 + $0x8] sm:$0xff]  ;;  %s256_s1 = smov [#allocation7]  }
  0x27   :  { %v44_v2 = vld [vmem:[#allocation5 + $0x10] sm:$0xff]  ;;  %v167_v3 = vpack.c.bf16 %v43_v1, %v42_v0  ;;  %v45_v4 = vld [vmem:[#allocation5 + $0x18] sm:$0xff]  ;;  %s135_s6 = sshll.u32 %s256_s1, 4  ;;  %s136_s6 = int_to_ptr.vmem [resolvable:$true] %s135_s6 }
  0x28   :  { %v40_v5 = vld [vmem:[#allocation2] sm:$0xff]  ;;  %v171_v6 = vpack.c.bf16 %v45_v4, %v44_v2  ;;  %v41_v7 = vld [vmem:[#allocation2 + $0x8] sm:$0xff]  ;;  %s224_s7 = scalar_lea.vmem %s136_s6, 256  ;;  %p229_p3 = scmp.lt.s32.totalorder %s136_s6, %s136_s6 }
  0x29   :  { %164 = vmatprep.mubr.msk.f32.mxu0 %vm46_vm0, %v40_v5  ;;  %168 = vmatprep.subr.bf16.mxu0 %v167_v3  ;;  %p225_p2 = scmp.ne.s32.totalorder %s136_s6, %s224_s7  ;;  %p230_p4 = scmp.lt.s32.totalorder %s224_s7, %s224_s7 }
  0x2a   :  { %170 = vmatpush3.bf16.msra.mxu0 %v167_v3 }
  0x2b   :  { %172 = vmatprep.subr.bf16.mxu0 %v171_v6  ;;  %p231_p5 = por %p230_p4, %p229_p3 }
  0x2d   :  { %p232_p6 = pnand %p231_p5, %p225_p2 }
  0x2e   :  { %174 = vmatpush3.bf16.msra.mxu0 %v171_v6 }
  0x31   :  { %165 = vmatmul.mubr.msk.f32.vlgmr.msra.gmra.mrb[0].mxu0 %vm46_vm0, %v41_v7 }
 0x104   :  { %v166_v8 = vpop.f32.mrb[0].mxu0 }
 0x105   :  { %129 = vst [vmem:[#allocation7 + $0x8] sm:$0xff] %v166_v8  ;;  %v119_v9 = vpop.f32.mrb[1].mxu0 }
 0x106   :  { %128 = vst [vmem:[#allocation7] sm:$0xff] %v119_v9 }
 0x107   :  { %235 = shalt.err (!%p232_p6)
}
 0x108   :  { %s236_s10 = scalar_lea.hbm %s319_s2, 256 }
 0x109   :  { %p237_p7 = scmp.ne.s32.totalorder %s319_s2, %s236_s10  ;;  %p240_p8 = scmp.lt.u32.totalorder %s236_s10, %s319_s2 }
 0x10b   :  { %p242_p9 = pnand %p240_p8, %p237_p7 }
 0x10d   :  { %245 = shalt.err (!%p242_p9)
}
 0x10e   :  { %141 = dma.vmem_to_hbm [thread:$0]  %s136_s6, 256, %s319_s2, [#allocation4], %s253_s19, %s253_s19, %s254_s20  }
 0x10f   :  { %250 = dma.done.wait [#allocation4], 256  }
 0x110   :  { %251 = vsyncadd [#allocation4], 4294967040 }
 0x111   :  { %145 = vsyncpa [#allocation3], 1 }
 0x112   :  { %146 = vsyncpa [#allocation6], 1 }
 0x113   :  { %147 = vsyncpa [#allocation4], 1 }

</bundles_post_ra>
